<compile_context>
chip_gen: v6e
topology: v6e:2x2x1
jax: 0.10.0
libtpu: 0.0.40
codegen_flags: <defaults>
</compile_context>

<pallas_src>
import functools
import math

import jax
import jax.numpy as jnp
from jax.experimental import pallas as pl
from jax.experimental.pallas import tpu as pltpu


def _label_smoothing_loss_kernel(out_ref, tgt_ref, mask_ref, rowsum_ref, *,
                                 label_smoothing, confidence,
                                 log_confidence, log_smoothing, batch_size):
    tb, c = out_ref.shape
    i = pl.program_id(0)

    logits = out_ref[...].astype(jnp.float32)          # (TB, C) upcast in-register
    valid = mask_ref[...] != 0                         # (TB, C) bool
    tgt = tgt_ref[...]                                 # (TB, 1) int32

    # Numerically stable log_softmax over the class (lane) dimension.
    # TODO(synk): for very large vocab (C >= ~64k) add a class-dim grid axis
    # with an online logsumexp accumulator; a single lane-dim block is used here.
    row_max = jnp.max(logits, axis=-1, keepdims=True)
    shifted = logits - row_max
    # TODO(synk): on v7x, if the bundle dump shows the per-element exp saturating
    # the EUP, switch to the bf16 EUP path (exp on bf16 shifted, f32 sum).
    lse = jnp.log(jnp.sum(jnp.exp(shifted), axis=-1, keepdims=True))
    log_p = shifted - lse                              # (TB, C)

    col_idx = jax.lax.broadcasted_iota(jnp.int32, (tb, c), 1)
    one_hot = col_idx == tgt                           # (TB, C) bool
    validf = valid.astype(jnp.float32)

    # The smoothed target takes only two nonzero values per row:
    #   confidence               at the target class (PyTorch scatter_)
    #   label_smoothing / (n-1)  at the other valid (mask != 0) classes
    # so the whole KL row sum reduces to masked lane reductions of log_p plus
    # per-row scalar math -- no (TB, C) pointwise/target/smooth temporaries.
    logp_tgt = jnp.sum(jnp.where(one_hot, log_p, 0.0), axis=-1, keepdims=True)
    logp_valid = jnp.sum(jnp.where(valid, log_p, 0.0), axis=-1, keepdims=True)
    n = jnp.sum(validf, axis=-1, keepdims=True)                       # (TB, 1)
    tgt_valid = jnp.sum(jnp.where(one_hot, validf, 0.0), axis=-1,
                        keepdims=True)                                # (TB, 1) in {0,1}

    denom = n - 1.0
    num_smooth = n - tgt_valid              # # classes receiving the smooth value
    sum_logp_smooth = logp_valid - tgt_valid * logp_tgt

    if confidence > 0.0:
        target_term = confidence * (log_confidence - logp_tgt)
    else:
        target_term = jnp.zeros_like(logp_tgt)
    if label_smoothing > 0.0:
        smooth_row = label_smoothing / denom                          # (TB, 1)
        log_smooth_row = log_smoothing - jnp.log(denom)               # (TB, 1)
        # Guard num_smooth == 0 (target is the only valid class): the smooth
        # contribution is an empty sum.  Select-based, so Inf/NaN in the
        # unselected branch never propagates.
        smooth_term = jnp.where(
            num_smooth > 0.0,
            smooth_row * (num_smooth * log_smooth_row - sum_logp_smooth),
            0.0)
    else:
        smooth_term = jnp.zeros_like(logp_tgt)

    rowsum = target_term + smooth_term                                # (TB, 1)

    # Zero the padded rows of the last tile (garbage logits / targets there can
    # produce NaN/Inf; the select discards it).  Keep this select-based and at
    # the per-row level -- do NOT refactor into a multiply-by-mask or remove it.
    row_idx = i * tb + jax.lax.broadcasted_iota(jnp.int32, (tb, 1), 0)
    rowsum = jnp.where(row_idx < batch_size, rowsum, 0.0)

    # Lane-dense (1, TB) output block; the tiny (TB,1)->(1,TB) relayout goes
    # through the XLU, which has slack in this kernel.
    rowsum_ref[...] = rowsum.reshape(1, tb)


def _hw_budgets():
    """Returns (per-f32-array target bytes for tile sizing, vmem_limit_bytes)."""
    vmem_cap = 64 * 1024 * 1024                   # conservative default (v7x)
    try:
        vmem_cap = int(pltpu.get_tpu_info().vmem_capacity_bytes)
    except Exception:
        pass
    if vmem_cap >= 100 * 1024 * 1024:             # v5e / v6e: 128 MiB per core
        return 8 * 1024 * 1024, 96 * 1024 * 1024
    # v7x: 64 MiB per core -> keep double-buffered input blocks plus the few
    # live (TB, C) f32 temporaries comfortably under the limit.
    return 3 * 1024 * 1024, 48 * 1024 * 1024


def _choose_tile_rows(batch, classes, target_bytes):
    tb = target_bytes // (classes * 4)
    if tb >= 128:
        tb = tb // 128 * 128      # lane-dense output block + aligned input tiles
    else:
        tb = max(32, tb // 32 * 32)   # int8 (32,128) / bf16 (16,128) packed tiles
    if tb >= batch:
        return batch              # single block covering the whole batch
    return tb


def label_smoothing_loss(outputs, targets, mask, *, label_smoothing=0.1):
    """outputs: (B, C) float, targets: (B,)/(B,1) int, mask: (B, C) -> scalar f32."""
    B, C = outputs.shape
    assert mask.shape == (B, C)
    confidence = 1.0 - label_smoothing

    targets = targets.reshape(B, 1).astype(jnp.int32)
    # Keep the mask stream narrow: a wide (f32/i32) mask would be up to ~1/3 of
    # all HBM bytes for this bandwidth-bound kernel.
    # TODO(synk): if callers' masks are per-row validity prefixes, accept a
    # (B, 1) valid-length instead and build the mask in-kernel from iota.
    if mask.dtype.itemsize > 1:
        mask = (mask != 0).astype(jnp.int8)

    target_bytes, vmem_limit = _hw_budgets()
    TB = _choose_tile_rows(B, C, target_bytes)
    num_tiles = pl.cdiv(B, TB)

    kernel = functools.partial(
        _label_smoothing_loss_kernel,
        label_smoothing=float(label_smoothing),
        confidence=float(confidence),
        log_confidence=math.log(confidence) if confidence > 0.0 else 0.0,
        log_smoothing=math.log(label_smoothing) if label_smoothing > 0.0 else 0.0,
        batch_size=B,
    )

    partials = pl.pallas_call(
        kernel,
        out_shape=jax.ShapeDtypeStruct((num_tiles, TB), jnp.float32),
        grid_spec=pltpu.PrefetchScalarGridSpec(
            num_scalar_prefetch=0,
            grid=(num_tiles,),
            in_specs=[
                pl.BlockSpec((TB, C), lambda i: (i, 0)),   # logits (native dtype)
                pl.BlockSpec((TB, 1), lambda i: (i, 0)),   # targets
                pl.BlockSpec((TB, C), lambda i: (i, 0)),   # mask (int8/bool)
            ],
            out_specs=pl.BlockSpec((1, TB), lambda i: (i, 0)),  # lane-dense rows
        ),
        compiler_params=pltpu.CompilerParams(
            # TODO(synk): on v7x verify in xprof that tiles shard across both
            # TensorCores; switch to pltpu.CORE_PARALLEL if only one is active.
            dimension_semantics=("parallel",),
            vmem_limit_bytes=vmem_limit,
        ),
    )(outputs, targets, mask)

    # reduction='batchmean': sum over all elements / batch_size (padded rows are 0).
    return jnp.sum(partials) / jnp.float32(B)


def _reference(outputs, targets, mask, label_smoothing=0.1):
    # Pure-JAX reference mirroring the PyTorch module (f32 math).
    outputs = outputs.astype(jnp.float32)
    maskf = (mask != 0).astype(jnp.float32)
    B, C = outputs.shape
    confidence = 1.0 - label_smoothing
    n = jnp.sum(maskf, axis=1, keepdims=True)
    smooth = label_smoothing / (n - 1.0) * maskf
    one_hot = jax.nn.one_hot(targets.reshape(B), C, dtype=bool)
    t = jnp.where(one_hot, confidence, smooth)
    log_p = jax.nn.log_softmax(outputs, axis=-1)
    pw = jnp.where(t > 0, t * (jnp.log(jnp.where(t > 0, t, 1.0)) - log_p), 0.0)
    return jnp.sum(pw) / B


if __name__ == "__main__":
    B, C = 8, 512
    key = jax.random.PRNGKey(0)
    k1, k2, k3 = jax.random.split(key, 3)

    # bf16 logits + int8 mask: no wrapper-side wide copies are made.
    outputs = jax.random.normal(k1, (B, C), dtype=jnp.bfloat16)
    targets = jax.random.randint(k2, (B, 1), 0, C, dtype=jnp.int32)
    mask = (jax.random.uniform(k3, (B, C)) < 0.7).astype(jnp.int8)
    mask = mask.at[:, :2].set(1)   # force >= 2 valid classes per row (n - 1 > 0)

    loss = label_smoothing_loss(outputs, targets, mask, label_smoothing=0.1)
    loss = jax.block_until_ready(loss)

    ref = _reference(outputs, targets, mask, label_smoothing=0.1)
    assert jnp.allclose(loss, ref, rtol=1e-4, atol=1e-4), (loss, ref)

    print("KERNEL_OK")
</pallas_src>

<mosaic_0001>
module attributes {stable_mosaic.version = 11 : i64} {
  func.func @_label_smoothing_loss_kernel(%arg0: i32, %arg1: memref<8x512xbf16, #tpu.memory_space<vmem>>, %arg2: memref<8x1xi32, #tpu.memory_space<vmem>>, %arg3: memref<8x512xi8, #tpu.memory_space<vmem>>, %arg4: memref<1x8xf32, #tpu.memory_space<vmem>>) attributes {dimension_semantics = [#tpu.dimension_semantics<parallel>], iteration_bounds = array<i64: 1>, scalar_prefetch = 0 : i64, scratch_operands = 0 : i64, tpu.core_type = #tpu.core_type<tc>, window_params = [{transform_indices = @transform_0, window_bounds = array<i64: 8, 512>}, {transform_indices = @transform_1, window_bounds = array<i64: 8, 1>}, {transform_indices = @transform_2, window_bounds = array<i64: 8, 512>}, {transform_indices = @transform_3, window_bounds = array<i64: 1, 8>}]} {
    %c0 = arith.constant 0 : index
    %c0_0 = arith.constant 0 : index
    %0 = vector.load %arg1[%c0, %c0_0] : memref<8x512xbf16, #tpu.memory_space<vmem>>, vector<8x512xbf16>
    %1 = arith.extf %0 : vector<8x512xbf16> to vector<8x512xf32>
    %c0_1 = arith.constant 0 : index
    %c0_2 = arith.constant 0 : index
    %2 = vector.load %arg3[%c0_1, %c0_2] : memref<8x512xi8, #tpu.memory_space<vmem>>, vector<8x512xi8>
    %c0_i8 = arith.constant 0 : i8
    %3 = vector.broadcast %c0_i8 : i8 to vector<8x512xi8>
    %4 = arith.cmpi ne, %2, %3 : vector<8x512xi8>
    %c0_3 = arith.constant 0 : index
    %c0_4 = arith.constant 0 : index
    %5 = vector.load %arg2[%c0_3, %c0_4] : memref<8x1xi32, #tpu.memory_space<vmem>>, vector<8x1xi32>
    %cst = arith.constant dense<0xFF800000> : vector<8xf32>
    %6 = vector.multi_reduction <maximumf>, %1, %cst [1] : vector<8x512xf32> to vector<8xf32>
    %7 = vector.shape_cast %6 : vector<8xf32> to vector<8x1xf32>
    %8 = vector.broadcast %7 : vector<8x1xf32> to vector<8x512xf32>
    %9 = arith.subf %1, %8 : vector<8x512xf32>
    %10 = math.exp %9 : vector<8x512xf32>
    %cst_5 = arith.constant dense<0.000000e+00> : vector<8xf32>
    %11 = vector.multi_reduction <add>, %10, %cst_5 [1] : vector<8x512xf32> to vector<8xf32>
    %12 = vector.shape_cast %11 : vector<8xf32> to vector<8x1xf32>
    %13 = math.log %12 : vector<8x1xf32>
    %14 = vector.broadcast %13 : vector<8x1xf32> to vector<8x512xf32>
    %15 = arith.subf %9, %14 : vector<8x512xf32>
    %16 = tpu.iota {dimensions = array<i32: 1>} : vector<8x512xi32>
    %17 = vector.broadcast %5 : vector<8x1xi32> to vector<8x512xi32>
    %18 = arith.cmpi eq, %16, %17 : vector<8x512xi32>
    %19 = arith.extui %4 : vector<8x512xi1> to vector<8x512xi32>
    %20 = arith.sitofp %19 : vector<8x512xi32> to vector<8x512xf32>
    %cst_6 = arith.constant 0.000000e+00 : f32
    %21 = vector.broadcast %cst_6 : f32 to vector<8x512xf32>
    %22 = arith.select %18, %15, %21 : vector<8x512xi1>, vector<8x512xf32>
    %cst_7 = arith.constant dense<0.000000e+00> : vector<8xf32>
    %23 = vector.multi_reduction <add>, %22, %cst_7 [1] : vector<8x512xf32> to vector<8xf32>
    %24 = vector.shape_cast %23 : vector<8xf32> to vector<8x1xf32>
    %cst_8 = arith.constant 0.000000e+00 : f32
    %25 = vector.broadcast %cst_8 : f32 to vector<8x512xf32>
    %26 = arith.select %4, %15, %25 : vector<8x512xi1>, vector<8x512xf32>
    %cst_9 = arith.constant dense<0.000000e+00> : vector<8xf32>
    %27 = vector.multi_reduction <add>, %26, %cst_9 [1] : vector<8x512xf32> to vector<8xf32>
    %28 = vector.shape_cast %27 : vector<8xf32> to vector<8x1xf32>
    %cst_10 = arith.constant dense<0.000000e+00> : vector<8xf32>
    %29 = vector.multi_reduction <add>, %20, %cst_10 [1] : vector<8x512xf32> to vector<8xf32>
    %30 = vector.shape_cast %29 : vector<8xf32> to vector<8x1xf32>
    %cst_11 = arith.constant 0.000000e+00 : f32
    %31 = vector.broadcast %cst_11 : f32 to vector<8x512xf32>
    %32 = arith.select %18, %20, %31 : vector<8x512xi1>, vector<8x512xf32>
    %cst_12 = arith.constant dense<0.000000e+00> : vector<8xf32>
    %33 = vector.multi_reduction <add>, %32, %cst_12 [1] : vector<8x512xf32> to vector<8xf32>
    %34 = vector.shape_cast %33 : vector<8xf32> to vector<8x1xf32>
    %cst_13 = arith.constant 1.000000e+00 : f32
    %35 = vector.broadcast %cst_13 : f32 to vector<8x1xf32>
    %36 = arith.subf %30, %35 : vector<8x1xf32>
    %37 = arith.subf %30, %34 : vector<8x1xf32>
    %38 = arith.mulf %34, %24 : vector<8x1xf32>
    %39 = arith.subf %28, %38 : vector<8x1xf32>
    %cst_14 = arith.constant -0.105360515 : f32
    %40 = vector.broadcast %cst_14 : f32 to vector<8x1xf32>
    %41 = arith.subf %40, %24 : vector<8x1xf32>
    %cst_15 = arith.constant 0.899999976 : f32
    %42 = vector.broadcast %cst_15 : f32 to vector<8x1xf32>
    %43 = arith.mulf %42, %41 : vector<8x1xf32>
    %cst_16 = arith.constant 1.000000e-01 : f32
    %44 = vector.broadcast %cst_16 : f32 to vector<8x1xf32>
    %45 = arith.divf %44, %36 : vector<8x1xf32>
    %46 = math.log %36 : vector<8x1xf32>
    %cst_17 = arith.constant -2.30258512 : f32
    %47 = vector.broadcast %cst_17 : f32 to vector<8x1xf32>
    %48 = arith.subf %47, %46 : vector<8x1xf32>
    %cst_18 = arith.constant 0.000000e+00 : f32
    %49 = vector.broadcast %cst_18 : f32 to vector<8x1xf32>
    %50 = arith.cmpf ogt, %37, %49 : vector<8x1xf32>
    %51 = arith.mulf %37, %48 : vector<8x1xf32>
    %52 = arith.subf %51, %39 : vector<8x1xf32>
    %53 = arith.mulf %45, %52 : vector<8x1xf32>
    %cst_19 = arith.constant 0.000000e+00 : f32
    %54 = vector.broadcast %cst_19 : f32 to vector<8x1xf32>
    %55 = arith.select %50, %53, %54 : vector<8x1xi1>, vector<8x1xf32>
    %56 = arith.addf %43, %55 : vector<8x1xf32>
    %c8_i32 = arith.constant 8 : i32
    %57 = arith.muli %arg0, %c8_i32 : i32
    %58 = tpu.iota {dimensions = array<i32: 0>} : vector<8x1xi32>
    %59 = vector.broadcast %57 : i32 to vector<8x1xi32>
    %60 = arith.addi %59, %58 : vector<8x1xi32>
    %c8_i32_20 = arith.constant 8 : i32
    %61 = vector.broadcast %c8_i32_20 : i32 to vector<8x1xi32>
    %62 = arith.cmpi slt, %60, %61 : vector<8x1xi32>
    %cst_21 = arith.constant 0.000000e+00 : f32
    %63 = vector.broadcast %cst_21 : f32 to vector<8x1xf32>
    %64 = arith.select %62, %56, %63 : vector<8x1xi1>, vector<8x1xf32>
    %65 = vector.shape_cast %64 : vector<8x1xf32> to vector<1x8xf32>
    %c0_22 = arith.constant 0 : index
    %c0_23 = arith.constant 0 : index
    %66 = vector.load %arg4[%c0_22, %c0_23] : memref<1x8xf32, #tpu.memory_space<vmem>>, vector<1x8xf32>
    tpu.vector_store %arg4[%c0_22, %c0_23], %65 {strides = array<i32>} : memref<1x8xf32, #tpu.memory_space<vmem>>, vector<1x8xf32>,
    return
  }
  func.func @transform_0(%arg0: i32) -> (i32, i32) {
    %c0_i32 = arith.constant 0 : i32
    %c0_i32_0 = arith.constant 0 : i32
    return %arg0, %c0_i32 : i32, i32
  }
  func.func @transform_1(%arg0: i32) -> (i32, i32) {
    %c0_i32 = arith.constant 0 : i32
    %c0_i32_0 = arith.constant 0 : i32
    return %arg0, %c0_i32 : i32, i32
  }
  func.func @transform_2(%arg0: i32) -> (i32, i32) {
    %c0_i32 = arith.constant 0 : i32
    %c0_i32_0 = arith.constant 0 : i32
    return %arg0, %c0_i32 : i32, i32
  }
  func.func @transform_3(%arg0: i32) -> (i32, i32) {
    %c0_i32 = arith.constant 0 : i32
    %c0_i32_0 = arith.constant 0 : i32
    return %arg0, %c0_i32 : i32, i32
  }
}

</mosaic_0001>

<bundles_post_ra>
// kernel: tpu_custom_call.1
= control target key start
LH: loop header
LB: loop body
LE: loop exit
PB: predicated region body
PF: predicated region fallthrough
CT: control target
= control target key end

     0   :  { %8 = vsyncpa [#allocation3], 0  ;;  %s328_s0 = inlined_call_operand.hbm [shape: bf16[8,512], index: 0, kind: input, shape index: {}]   ;;  %s329_s1 = inlined_call_operand.vmem [shape: s32[8,1], index: 1, kind: input, shape index: {}]   ;;  %s330_s2 = inlined_call_operand.vmem [shape: s8[8,512], index: 2, kind: input, shape index: {}]   ;;  %s331_s3 = inlined_call_operand.hbm [shape: f32[1,8], index: 3, kind: output, shape index: {}]  }
   0x1   :  { %9 = vsyncpa [#allocation4], 0  ;;  %s243_s12 = smov [#allocation2]  }
   0x2   :  { %s16_s13 = sshll.u32 %s243_s12, 4  ;;  %s17_s13 = int_to_ptr.vmem [resolvable:$true] %s16_s13 }
   0x3   :  { %s207_s14 = scalar_lea.vmem %s17_s13, 256  ;;  %p212_p1 = scmp.lt.s32.totalorder %s17_s13, %s17_s13 }
   0x4   :  { %p208_p0 = scmp.ne.s32.totalorder %s17_s13, %s207_s14  ;;  %p213_p2 = scmp.lt.s32.totalorder %s207_s14, %s207_s14 }
   0x6   :  { %p214_p3 = por %p213_p2, %p212_p1 }
   0x8   :  { %p215_p4 = pnand %p214_p3, %p208_p0 }
   0xa   :  { %218 = shalt.err (!%p215_p4)
}
   0xb   :  { %19 = dma.hbm_to_vmem [thread:$0]  %s328_s0, 256, %s17_s13, [#allocation3]  }
   0xc   :  { %239 = dma.done.wait [#allocation3], 256  }
   0xd   :  { %240 = vsyncadd [#allocation3], 4294967040  ;;  %v29_v0 = vld [vmem:[#allocation2] sm:$0xff]  ;;  %v30_v1 = vld [vmem:[#allocation2 + $0x8] sm:$0xff]  ;;  %v244_v10 = vmov 0   ;;  %v245_v18 = vmov 0.0   ;;  %v66_v45 = vlaneseq }
   0xe   :  { %v31_v2 = vunpack.c.l.bf16 %v29_v0  ;;  %v32_v3 = vunpack.c.h.bf16 %v29_v0  ;;  %v33_v4 = vunpack.c.l.bf16 %v30_v1  ;;  %v34_v5 = vunpack.c.h.bf16 %v30_v1  ;;  %v37_v9 = vld [vmem:[%s329_s1] sm:$0xff]  ;;  %183 = vset.pattern.permute.xlu1 %v244_v10  ;;  %184 = vset.pattern.permute.xlu0 %v244_v10  ;;  %s246_s1 = smov [#allocation5]  }
   0xf   :  { %72 = vperm.xlu1 %183, %v37_v9   ;;  %v35_v11 = vld [vmem:[%s330_s2] sm:$0xff]  ;;  %v300_v46 = vand.u32 127, %v66_v45  ;;  %v153_v25 = vshrl.u32 %v66_v45, 7  ;;  %s165_s2 = sshll.u32 %s246_s1, 4  ;;  %vm157_vm10 = vcmask 57344   ;;  %s166_s2 = int_to_ptr.vmem [resolvable:$true] %s165_s2 }
  0x10   :  { %v38_v6 = vmax.f32 %v31_v2, %v32_v3  ;;  %v39_v7 = vmax.f32 %v33_v4, %v34_v5  ;;  %vm36_vm0 = vnez %v35_v11  ;;  %s219_s20 = scalar_lea.vmem %s166_s2, 16  ;;  %s223_s21 = scalar_lea.vmem %s166_s2, 32 }
  0x11   :  { %v78_v12 = vsel %vm36_vm0, 16843009, %v244_v10  ;;  %v68_v47 = vadd.s32 128, %v300_v46  ;;  %v69_v49 = vadd.s32 256, %v300_v46  ;;  %v70_v52 = vadd.s32 384, %v300_v46  ;;  %p220_p5 = scmp.ne.s32.totalorder %s166_s2, %s219_s20  ;;  %p224_p6 = scmp.lt.s32.totalorder %s166_s2, %s166_s2 }
  0x12   :  { %v40_v8 = vmax.f32 %v38_v6, %v39_v7  ;;  %v79_v13 = vunpack.c.0.s8 %v78_v12  ;;  %v80_v14 = vunpack.c.1.s8 %v78_v12  ;;  %v81_v15 = vunpack.c.2.s8 %v78_v12  ;;  %p225_p7 = scmp.lt.s32.totalorder %s223_s21, %s219_s20 }
  0x13   :  { %v82_v21 = vunpack.c.3.s8 %v78_v12 }
  0x14   :  { %41 = vmax.xlane.f32.xlu0 %v40_v8  ;;  %vm276_vm1 = vcmp.ne.s32.totalorder %v79_v13, 0  ;;  %vm280_vm2 = vcmp.ne.s32.totalorder %v80_v14, 0  ;;  %vm288_vm3 = vcmp.ne.s32.totalorder %v81_v15, 0  ;;  %p226_p8 = por %p225_p7, %p224_p6 }
  0x15   :  { %v174_v19 = vsel %vm276_vm1, 1.0, %v245_v18  ;;  %v175_v20 = vsel %vm280_vm2, 1.0, %v245_v18  ;;  %v176_v24 = vsel %vm288_vm3, 1.0, %v245_v18  ;;  %vm294_vm4 = vcmp.ne.s32.totalorder %v82_v21, 0 }
  0x16   :  { %v113_v23 = vadd.f32 %v175_v20, %v174_v19  ;;  %v177_v27 = vsel %vm294_vm4, 1.0, %v245_v18  ;;  %p227_p9 = pnand %p226_p8, %p220_p5 }
  0x18   :  { %v114_v26 = vadd.f32 %v176_v24, %v113_v23 }
  0x1a   :  { %v115_v28 = vadd.f32 %v177_v27, %v114_v26 }
  0x33   :  { %116 = vadd.xlane.f32.xlu1 %v115_v28 }
  0x8a   :  { %v73_v48 = vpop.permute.xlu1 %72 }
  0x8b   :  { %vm74_vm5 = vcmp.eq.s32.totalorder %v300_v46, %v73_v48  ;;  %vm75_vm6 = vcmp.eq.s32.totalorder %v68_v47, %v73_v48  ;;  %vm76_vm7 = vcmp.eq.s32.totalorder %v69_v49, %v73_v48  ;;  %vm77_vm8 = vcmp.eq.s32.totalorder %v70_v52, %v73_v48 }
  0x8c   :  { %v118_v50 = vsel %vm74_vm5, %v174_v19, 0.0  ;;  %v119_v51 = vsel %vm75_vm6, %v175_v20, 0.0  ;;  %v120_v54 = vsel %vm76_vm7, %v176_v24, 0.0  ;;  %v121_v56 = vsel %vm77_vm8, %v177_v27, 0.0 }
  0x8d   :  { %v122_v53 = vadd.f32 %v119_v51, %v118_v50 }
  0x8f   :  { %v123_v55 = vadd.f32 %v122_v53, %v120_v54 }
  0x91   :  { %v124_v57 = vadd.f32 %v123_v55, %v121_v56 }
  0x9d   :  { %v42_v29 = vpop.xlane.xlu0 %41 }
  0x9e   :  { %v43_v30 = vsub.f32 %v31_v2, %v42_v29  ;;  %v44_v31 = vsub.f32 %v32_v3, %v42_v29  ;;  %v45_v32 = vsub.f32 %v33_v4, %v42_v29  ;;  %v46_v33 = vsub.f32 %v34_v5, %v42_v29 }
  0xa0   :  { %v47_v34 = vmul.f32 1.442695, %v43_v30  ;;  %v49_v35 = vmul.f32 1.442695, %v44_v31  ;;  %v51_v36 = vmul.f32 1.442695, %v45_v32 }
  0xa1   :  { %v53_v37 = vmul.f32 1.442695, %v46_v33 }
  0xa2   :  { %185 = vpow2.f32 %v47_v34  ;;  %v154_v34 = vsub.s32 %v300_v46, %v153_v25 }
  0xa3   :  { %187 = vpow2.f32 %v49_v35 }
  0xa4   :  { %189 = vpow2.f32 %v51_v36 }
  0xa5   :  { %191 = vpow2.f32 %v53_v37 }
  0xaf   :  { %v186_v38 = vpop.eup %185 }
  0xb0   :  { %v188_v39 = vpop.eup %187 }
  0xb1   :  { %v55_v40 = vadd.f32 %v188_v39, %v186_v38  ;;  %v190_v41 = vpop.eup %189 }
  0xb2   :  { %v192_v43 = vpop.eup %191 }
  0xb3   :  { %v56_v42 = vadd.f32 %v190_v41, %v55_v40 }
  0xb5   :  { %v57_v44 = vadd.f32 %v192_v43, %v56_v42 }
  0xb7   :  { %58 = vadd.xlane.f32.xlu0 %v57_v44 }
  0xbb   :  { %125 = vadd.xlane.f32.xlu0 %v124_v57 }
  0xbc   :  { %v117_v15 = vpop.xlane.xlu1 %116 }
  0xbd   :  { %v178_v16 = vadd.f32 -1.0, %v117_v15 }
 0x140   :  { %v59_v58 = vpop.xlane.xlu0 %58 }
 0x141   :  { %193 = vlog2.f32 %v59_v58 }
 0x142   :  { %195 = vlog2.f32 %v178_v16 }
 0x143   :  { %197 = vrcp.f32 %v178_v16 }
 0x144   :  { %v126_v18 = vpop.xlane.xlu0 %125 }
 0x145   :  { %v128_v23 = vsub.f32 %v117_v15, %v126_v18 }
 0x147   :  { %vm138_vm9 = vcmp.gt.f32.partialorder %v128_v23, 0.0 }
 0x14e   :  { %v194_v59 = vpop.eup %193 }
 0x14f   :  { %v61_v60 = vmul.f32 0.6931472, %v194_v59  ;;  %v196_v17 = vpop.eup %195 }
 0x150   :  { %v136_v19 = vmul.f32 0.6931472, %v196_v17  ;;  %v198_v24 = vpop.eup %197 }
 0x151   :  { %v62_v61 = vsub.f32 %v43_v30, %v61_v60  ;;  %v63_v62 = vsub.f32 %v44_v31, %v61_v60  ;;  %v64_v63 = vsub.f32 %v45_v32, %v61_v60  ;;  %v65_v0 = vsub.f32 %v46_v33, %v61_v60 }
 0x152   :  { %v137_v21 = vsub.f32 -2.3025851, %v136_v19  ;;  %v134_v30 = vmul.f32 0.1, %v198_v24 }
 0x153   :  { %v95_v1 = vsel %vm74_vm5, %v62_v61, 0.0  ;;  %v96_v2 = vsel %vm75_vm6, %v63_v62, 0.0  ;;  %v104_v4 = vsel %vm276_vm1, %v62_v61, 0.0  ;;  %v105_v5 = vsel %vm280_vm2, %v63_v62, 0.0 }
 0x154   :  { %v99_v3 = vadd.f32 %v96_v2, %v95_v1  ;;  %v97_v6 = vsel %vm76_vm7, %v64_v63, 0.0  ;;  %v108_v7 = vadd.f32 %v105_v5, %v104_v4  ;;  %v98_v9 = vsel %vm77_vm8, %v65_v0, 0.0 }
 0x155   :  { %v106_v10 = vsel %vm288_vm3, %v64_v63, 0.0  ;;  %v107_v13 = vsel %vm294_vm4, %v65_v0, 0.0  ;;  %v139_v27 = vmul.f32 %v137_v21, %v128_v23 }
 0x156   :  { %v100_v8 = vadd.f32 %v99_v3, %v97_v6  ;;  %v109_v12 = vadd.f32 %v108_v7, %v106_v10 }
 0x158   :  { %v101_v11 = vadd.f32 %v100_v8, %v98_v9  ;;  %v110_v14 = vadd.f32 %v109_v12, %v107_v13 }
 0x15a   :  { %102 = vadd.xlane.f32.xlu0 %v101_v11 }
 0x15e   :  { %111 = vadd.xlane.f32.xlu0 %v110_v14 }
 0x1e3   :  { %v103_v20 = vpop.xlane.xlu0 %102 }
 0x1e4   :  { %v129_v22 = vmul.f32 %v126_v18, %v103_v20  ;;  %v131_v29 = vsub.f32 -0.105360515, %v103_v20 }
 0x1e6   :  { %v132_v33 = vmul.f32 0.9, %v131_v29 }
 0x1e7   :  { %v112_v26 = vpop.xlane.xlu0 %111 }
 0x1e8   :  { %v130_v28 = vsub.f32 %v112_v26, %v129_v22 }
 0x1ea   :  { %v140_v31 = vsub.f32 %v139_v27, %v130_v28 }
 0x1ec   :  { %v141_v32 = vmul.f32 %v140_v31, %v134_v30 }
 0x1ee   :  { %v142_v35 = vsel %vm138_vm9, %v141_v32, 0.0 }
 0x1ef   :  { %v143_v36 = vadd.f32 %v142_v35, %v132_v33 }
 0x1f1   :  { %v155_v37 = vrot.slane %v143_v36, %v154_v34 }
 0x1f3   :  { %158 = vst.msk [vmem:[#allocation5] sm:$0x1] %vm157_vm10, %v155_v37 }
 0x1f4   :  { %230 = shalt.err (!%p227_p9)
}
 0x1f5   :  { %168 = dma.vmem_to_hbm [thread:$0]  %s166_s2, 16, %s331_s3, [#allocation4]  }
 0x1f6   :  { %241 = dma.done.wait [#allocation4], 16  }
 0x1f7   :  { %242 = vsyncadd [#allocation4], 4294967280 }
 0x1f8   :  { %172 = vsyncpa [#allocation3], 1 }
 0x1f9   :  { %173 = vsyncpa [#allocation4], 1 }

</bundles_post_ra>
